<compile_context>
chip_gen: v6e
topology: v6e:2x2x1
jax: 0.10.0
libtpu: 0.0.40
codegen_flags: <defaults>
</compile_context>

<pallas_src>
import jax
import jax.numpy as jnp
from jax import lax
from jax.experimental import pallas as pl
from jax.experimental.pallas import tpu as pltpu


def _round_up(x, m):
    return -(-x // m) * m


def _vmem_capacity_bytes():
    try:
        return int(pltpu.get_tpu_info().vmem_capacity_bytes)
    except Exception:
        return 64 * 1024 * 1024          # conservative default (v7x per-core)


def pack_multires_weights(weights, biases, stride, compute_dtype=jnp.bfloat16):
    """One-time (init-time) repack of all coder filters into one dense matrix.

    weights: list of [N_i, C_in, K_i]; biases: list of [N_i]; stride: int S.
    Returns:
      w_nk : [N_total, C_in * K_emb]   K-fused filterbank (compute_dtype)
      b2   : [N_total, 1]              float32 bias (added post-accumulation)
      meta : dict of static ints for the forward pass
    """
    S = int(stride)
    ks = [int(w.shape[2]) for w in weights]
    c_in = int(weights[0].shape[1])
    k_max = max(ks)

    # Correctness guards (PyTorch per-coder padding = (K_i - S)//2):
    for k_i in ks:
        if k_i < S:
            raise ValueError(f"kernel_size {k_i} < stride {S}: negative padding")
        if (k_max - k_i) % 2 != 0:
            raise ValueError(
                "mixed kernel-size parity: centred zero-embedding would shift "
                "this coder by one sample relative to PyTorch")
    pad_max = (k_max - S) // 2
    k_emb = _round_up(k_max, S)

    rows = []
    for w in weights:
        n_i, ci, k_i = w.shape
        assert ci == c_in, "all coders must share in_channels"
        off = pad_max - (k_i - S) // 2          # == (k_max - k_i) // 2, >= 0
        w_full = jnp.zeros((n_i, c_in, k_emb), dtype=jnp.float32)
        w_full = w_full.at[:, :, off:off + k_i].set(w.astype(jnp.float32))
        rows.append(w_full)
    w_all = jnp.concatenate(rows, axis=0)        # [N_total, C_in, K_emb]
    n_total = int(w_all.shape[0])

    # K-fused dense filterbank; contraction index is (c, k) flattened.
    w_nk = w_all.reshape(n_total, c_in * k_emb).astype(compute_dtype)
    b2 = jnp.concatenate(biases, axis=0).reshape(n_total, 1).astype(jnp.float32)

    meta = dict(stride=S, k_max=k_max, pad_max=pad_max,
                k_emb=k_emb, c_in=c_in, n_total=n_total)
    return w_nk, b2, meta


def multires_enc_forward(x, w_nk, b2, *, stride, k_max, pad_max, out_dtype=None):
    """x: [B, C_in, T] -> NCW output [B, N_total, L_out] (exact, no padding)."""
    B, c_in, T = x.shape
    S = int(stride)
    n_total, CK = w_nk.shape
    assert CK % c_in == 0, "packed weight width must be c_in * k_emb"
    k_emb = CK // c_in
    assert k_emb % S == 0 and k_emb >= k_max
    out_dtype = x.dtype if out_dtype is None else out_dtype

    in_dtype = w_nk.dtype
    in_itemsize = jnp.dtype(in_dtype).itemsize
    out_itemsize = jnp.dtype(out_dtype).itemsize

    L_out = (T + 2 * pad_max - k_max) // S + 1
    assert L_out >= 1, "signal too short for the largest kernel"

    # ---- lane tile over output frames --------------------------------------
    # Multiple of 128 -> lane-dense stores; the final ragged tile (if any) is
    # masked by Pallas on write, so no post-kernel crop of the output is needed.
    if L_out < 128:
        tile_l = L_out                           # block == full array dim
    else:
        tile_l = min(1024, (L_out // 128) * 128)
    num_tiles = -(-L_out // tile_l)
    l_pad = num_tiles * tile_l

    # ---- split the fused dot over N so each f32 result stays ~<= 128 KiB ----
    acc_budget = 128 * 1024
    max_rows = max(8, (acc_budget // (4 * tile_l)) // 8 * 8)
    if n_total <= max_rows:
        n_chunk = n_total
    else:
        n_chunks_count = -(-n_total // max_rows)
        n_chunk = _round_up(-(-n_total // n_chunks_count), 8)
    n_starts = list(range(0, n_total, n_chunk))

    # ---- shift-expanded input (im2col over the embedded window) ------------
    #   xe[b, c*k_emb + k, l] = x_pad[b, c, l*S + k]
    # Built once in the wrapper (R x input bytes, << output bytes when
    # n_total >> c_in*k_emb); all kernel accesses become BlockSpec-aligned.
    total_len = (l_pad - 1) * S + k_emb
    right = total_len - (T + pad_max)
    x_c = x.astype(in_dtype)
    x_pad = jnp.pad(x_c, ((0, 0), (0, 0), (pad_max, max(right, 0))))
    x_pad = x_pad[:, :, :total_len]
    cols = [x_pad[:, :, k:k + (l_pad - 1) * S + 1:S] for k in range(k_emb)]
    xe = jnp.stack(cols, axis=2).reshape(B, CK, l_pad)

    def kernel(xe_ref, w_ref, b_ref, o_ref):
        # xe_ref [1, CK, tile_l] ; w_ref [n_total, CK] ; b_ref [n_total, 1]
        # o_ref  [1, n_total, tile_l]
        slab = xe_ref[0]                                     # [CK, tile_l]
        for n0 in n_starts:                                  # static unroll
            n1 = min(n0 + n_chunk, n_total)
            acc = jnp.dot(w_ref[n0:n1, :], slab,
                          preferred_element_type=jnp.float32)
            o_ref[0, n0:n1, :] = (acc + b_ref[n0:n1, :]).astype(o_ref.dtype)

    # ---- VMEM budget: derived from actual block footprint + chip capacity ---
    w_vmem = _round_up(n_total, 8) * _round_up(CK, 128) * in_itemsize
    b_vmem = _round_up(n_total, 8) * 128 * 4
    xe_vmem = 2 * _round_up(CK, 8) * _round_up(tile_l, 128) * in_itemsize
    o_vmem = 2 * _round_up(n_total, 8) * _round_up(tile_l, 128) * out_itemsize
    required = w_vmem + b_vmem + xe_vmem + o_vmem
    cap = _vmem_capacity_bytes()
    vmem_limit = int(min(cap * 3 // 4, max(32 * 1024 * 1024, 4 * required)))

    flops = 2 * B * L_out * n_total * CK
    bytes_accessed = (xe.size * in_itemsize + w_nk.size * in_itemsize
                      + b2.size * 4 + B * n_total * L_out * out_itemsize)

    out = pl.pallas_call(
        kernel,
        out_shape=jax.ShapeDtypeStruct((B, n_total, L_out), out_dtype),
        grid=(B, num_tiles),
        in_specs=[
            # shift-expanded input: one aligned lane tile per grid step.
            pl.BlockSpec((1, CK, tile_l), lambda b, j: (b, 0, j)),
            # dense K-fused weights + bias: resident for the whole call.
            pl.BlockSpec((n_total, CK), lambda b, j: (0, 0)),
            pl.BlockSpec((n_total, 1), lambda b, j: (0, 0)),
        ],
        out_specs=pl.BlockSpec((1, n_total, tile_l), lambda b, j: (b, 0, j)),
        compiler_params=pltpu.CompilerParams(
            # No cross-grid reduction (everything is inside the body), so both
            # axes are safely parallel -> uses both TensorCores on v7x.
            dimension_semantics=("parallel", "parallel"),
            vmem_limit_bytes=vmem_limit,
        ),
        cost_estimate=pl.CostEstimate(flops=flops, transcendentals=0,
                                      bytes_accessed=bytes_accessed),
    )(xe, w_nk, b2)

    return out                                   # already NCW [B, N, L_out]


multires_enc_pallas = jax.jit(
    multires_enc_forward,
    static_argnames=("stride", "k_max", "pad_max", "out_dtype"))


def multires_enc_reference(x, weights, biases, stride):
    """Pure-JAX reference: per-coder Conv1d, then concat along channel dim."""
    outs = []
    for w, b in zip(weights, biases):
        k = w.shape[2]
        pad = (k - stride) // 2
        y = lax.conv_general_dilated(
            x, w, window_strides=(stride,), padding=[(pad, pad)],
            dimension_numbers=("NCH", "OIH", "NCH"))
        outs.append(y + b[None, :, None])
    return jnp.concatenate(outs, axis=1)


def _make_coders(key, c_in, kernel_sizes, n_feats):
    keys = jax.random.split(key, 2 * len(kernel_sizes))
    weights, biases = [], []
    for i, (k_sz, n_f) in enumerate(zip(kernel_sizes, n_feats)):
        weights.append(
            jax.random.normal(keys[2 * i], (n_f, c_in, k_sz), jnp.float32) * 0.1)
        biases.append(
            jax.random.normal(keys[2 * i + 1], (n_f,), jnp.float32) * 0.01)
    return weights, biases


if __name__ == "__main__":
    key = jax.random.PRNGKey(0)
    k_x, k_c1, k_c2, k_x3 = jax.random.split(key, 4)

    B, C_in, T = 2, 1, 64
    stride = 4
    x = jax.random.normal(k_x, (B, C_in, T), dtype=jnp.float32)

    # Test 1: even kernel sizes, float32 path (tight check vs conv reference).
    ks1, nf1 = [4, 8, 16], [16, 16, 16]
    w1, b1 = _make_coders(k_c1, C_in, ks1, nf1)
    w_nk1, bias1, m1 = pack_multires_weights(w1, b1, stride,
                                             compute_dtype=jnp.float32)
    out1 = multires_enc_pallas(x, w_nk1, bias1, stride=m1["stride"],
                               k_max=m1["k_max"], pad_max=m1["pad_max"])
    out1 = jax.block_until_ready(out1)
    ref1 = multires_enc_reference(x, w1, b1, stride)
    assert out1.shape == (B, sum(nf1), T // stride), out1.shape
    assert jnp.allclose(out1, ref1, atol=1e-4, rtol=1e-4), "mismatch (even K, f32)"

    # Test 2: odd kernel sizes (exercises the parity / centring path), float32.
    ks2, nf2 = [5, 9, 13], [16, 16, 16]
    w2, b2l = _make_coders(k_c2, C_in, ks2, nf2)
    w_nk2, bias2, m2 = pack_multires_weights(w2, b2l, stride,
                                             compute_dtype=jnp.float32)
    out2 = multires_enc_pallas(x, w_nk2, bias2, stride=m2["stride"],
                               k_max=m2["k_max"], pad_max=m2["pad_max"])
    out2 = jax.block_until_ready(out2)
    ref2 = multires_enc_reference(x, w2, b2l, stride)
    assert out2.shape == ref2.shape, (out2.shape, ref2.shape)
    assert jnp.allclose(out2, ref2, atol=1e-4, rtol=1e-4), "mismatch (odd K, f32)"

    # Test 3: bf16 fast path, longer signal (multi-tile grid, ragged masked
    # final tile, N-chunked fused dot).  Reference uses bf16-rounded inputs in
    # f32 math, so only accumulation-order noise remains.
    T3 = 4000
    x3 = jax.random.normal(k_x3, (B, C_in, T3), dtype=jnp.float32)
    w_nk3, bias3, m3 = pack_multires_weights(w1, b1, stride,
                                             compute_dtype=jnp.bfloat16)
    out3 = multires_enc_pallas(x3, w_nk3, bias3, stride=m3["stride"],
                               k_max=m3["k_max"], pad_max=m3["pad_max"])
    out3 = jax.block_until_ready(out3)
    x3_q = x3.astype(jnp.bfloat16).astype(jnp.float32)
    w1_q = [w.astype(jnp.bfloat16).astype(jnp.float32) for w in w1]
    ref3 = multires_enc_reference(x3_q, w1_q, b1, stride)
    assert out3.shape == ref3.shape, (out3.shape, ref3.shape)
    assert jnp.allclose(out3, ref3, atol=2e-3, rtol=2e-3), "mismatch (bf16 path)"

    print("KERNEL_OK")
</pallas_src>

<mosaic_0001>
module attributes {stable_mosaic.version = 11 : i64} {
  func.func @kernel(%arg0: i32, %arg1: i32, %arg2: memref<1x16x16xf32, #tpu.memory_space<vmem>>, %arg3: memref<48x16xf32, #tpu.memory_space<vmem>>, %arg4: memref<48x1xf32, #tpu.memory_space<vmem>>, %arg5: memref<1x48x16xf32, #tpu.memory_space<vmem>>) attributes {dimension_semantics = [#tpu.dimension_semantics<parallel>, #tpu.dimension_semantics<parallel>], iteration_bounds = array<i64: 2, 1>, scalar_prefetch = 0 : i64, scratch_operands = 0 : i64, tpu.core_type = #tpu.core_type<tc>, window_params = [{transform_indices = @transform_0, window_bounds = array<i64: 1, 16, 16>}, {pipeline_mode = #tpu.pipeline_mode<synchronous>, transform_indices = @transform_1, window_bounds = array<i64: 48, 16>}, {pipeline_mode = #tpu.pipeline_mode<synchronous>, transform_indices = @transform_2, window_bounds = array<i64: 48, 1>}, {transform_indices = @transform_3, window_bounds = array<i64: 1, 48, 16>}]} {
    %c0 = arith.constant 0 : index
    %c0_0 = arith.constant 0 : index
    %c0_1 = arith.constant 0 : index
    %0 = vector.load %arg2[%c0, %c0_0, %c0_1] : memref<1x16x16xf32, #tpu.memory_space<vmem>>, vector<1x16x16xf32>
    %1 = vector.shape_cast %0 : vector<1x16x16xf32> to vector<16x16xf32>
    %c0_2 = arith.constant 0 : index
    %c0_3 = arith.constant 0 : index
    %2 = vector.load %arg3[%c0_2, %c0_3] : memref<48x16xf32, #tpu.memory_space<vmem>>, vector<48x16xf32>
    %cst = arith.constant dense<0.000000e+00> : vector<48x16xf32>
    %3 = tpu.matmul %2, %1, %cst {dimension_numbers = #tpu.dot_dimension_numbers<[1], [0], [0], [1], [0, 0, 1, 1], [], []>} : vector<48x16xf32>, vector<16x16xf32>, vector<48x16xf32> -> vector<48x16xf32>
    %c0_4 = arith.constant 0 : index
    %c0_5 = arith.constant 0 : index
    %4 = vector.load %arg4[%c0_4, %c0_5] : memref<48x1xf32, #tpu.memory_space<vmem>>, vector<48x1xf32>
    %5 = vector.broadcast %4 : vector<48x1xf32> to vector<48x16xf32>
    %6 = arith.addf %3, %5 : vector<48x16xf32>
    %c0_6 = arith.constant 0 : index
    %c0_7 = arith.constant 0 : index
    %c0_8 = arith.constant 0 : index
    %7 = vector.load %arg5[%c0_6, %c0_7, %c0_8] : memref<1x48x16xf32, #tpu.memory_space<vmem>>, vector<1x48x16xf32>
    %8 = vector.shape_cast %7 : vector<1x48x16xf32> to vector<48x16xf32>
    %9 = vector.shape_cast %6 : vector<48x16xf32> to vector<1x48x16xf32>
    tpu.vector_store %arg5[%c0_6, %c0_7, %c0_8], %9 {strides = array<i32>} : memref<1x48x16xf32, #tpu.memory_space<vmem>>, vector<1x48x16xf32>,
    return
  }
  func.func @transform_0(%arg0: i32, %arg1: i32) -> (i32, i32, i32) {
    %c0_i32 = arith.constant 0 : i32
    %c0_i32_0 = arith.constant 0 : i32
    return %arg0, %c0_i32, %arg1 : i32, i32, i32
  }
  func.func @transform_1(%arg0: i32, %arg1: i32) -> (i32, i32) {
    %c0_i32 = arith.constant 0 : i32
    %c0_i32_0 = arith.constant 0 : i32
    %c0_i32_1 = arith.constant 0 : i32
    return %c0_i32, %c0_i32_0 : i32, i32
  }
  func.func @transform_2(%arg0: i32, %arg1: i32) -> (i32, i32) {
    %c0_i32 = arith.constant 0 : i32
    %c0_i32_0 = arith.constant 0 : i32
    %c0_i32_1 = arith.constant 0 : i32
    return %c0_i32, %c0_i32_0 : i32, i32
  }
  func.func @transform_3(%arg0: i32, %arg1: i32) -> (i32, i32, i32) {
    %c0_i32 = arith.constant 0 : i32
    %c0_i32_0 = arith.constant 0 : i32
    return %arg0, %c0_i32, %arg1 : i32, i32, i32
  }
}

</mosaic_0001>

<bundles_post_ra>
// kernel: multires_enc_forward.1
= control target key start
LH: loop header
LB: loop body
LE: loop exit
PB: predicated region body
PF: predicated region fallthrough
CT: control target
= control target key end

     0   :  { %s564_s12 = smov 0   ;;  %s566_s13 = smov 0   ;;  %s649_s0 = inlined_call_operand.vmem [shape: f32[2,16,16], index: 0, kind: input, shape index: {}]   ;;  %s650_s1 = inlined_call_operand.vmem [shape: f32[48,16], index: 1, kind: input, shape index: {}]   ;;  %s651_s2 = inlined_call_operand.vmem [shape: f32[48,1], index: 2, kind: input, shape index: {}]   ;;  %s652_s3 = inlined_call_operand.vmem [shape: f32[2,48,16], index: 3, kind: output, shape index: {}]  }
   0x1   :  { %s568_s14 = smov 0  }
   0x2 LB: > { %s25_s15 = sadd.s32 1, %s537_s13  ;;  %p453_p0 = scmp.ge.s32.totalorder %s541_s14, 1  ;;  %s541_s14 = sphi %s568_s14, %s13_s14   ;;  %s537_s13 = sphi %s566_s13, %s654_s13   ;;  %s533_s12 = sphi %s564_s12, %s653_s12  }
   0x3   : > { %p27_p1 = scmp.ge.s32.totalorder %s25_s15, 2  ;;  %p156_p2 = scmp.lt.s32.totalorder %s541_s14, 3 }
   0x5   : > { %s656_s15 = smov (%p27_p1, %s25_s15), 0  ;;  %p157_p3 = pnand %p453_p0, %p156_p2 }
   0x6   : > { %p186_p4 = scmp.lt.s32.totalorder (!%p157_p3), %s533_s12, 1 }
   0x7   : > { %160 = sbr.rel (%p157_p3) target bundleno = 222 (0xde), region = 32 }
   0xc   : > { %v204_v0 = vld [vmem:[%s650_s1] sm:$0xff]  ;;  %vm246_vm0 = vcmask 130048   ;;  %v206_v1 = vld [vmem:[%s650_s1 + $0x10] sm:$0xff]  ;;  %s658_s12 = smov (!%p186_p4, %s533_s12), 1  ;;  %v543_v2 = vmov 0   ;;  %v205_v7 = vld [vmem:[%s650_s1 + $0x8] sm:$0xff] }
   0xd   : > { %478 = vmatprep.mubr.msk.f32.mxu0 %vm246_vm0, %v204_v0  ;;  %481 = vmatprep.mubr.msk.f32.mxu1 %vm246_vm0, %v206_v1  ;;  %v212_v3 = vld [vmem:[%s651_s2 + $0x10] sm:$0xff]  ;;  %v210_v4 = vld [vmem:[%s651_s2] sm:$0xff]  ;;  %s465_s24 = sshll.u32 %s658_s12, 4  ;;  %v207_v8 = vld [vmem:[%s650_s1 + $0x18] sm:$0xff]  ;;  %s491_s21 = smul.u32 48, %s658_s12 }
   0xe   : > { %518 = vset.pattern.permute.xlu1 %v543_v2  ;;  %517 = vset.pattern.permute.xlu0 %v543_v2  ;;  %s193_s27 = scalar_lea.vmem %s649_s0, %s465_s24  ;;  %v208_v9 = vld [vmem:[%s650_s1 + $0x20] sm:$0xff]  ;;  %v213_v10 = vld [vmem:[%s651_s2 + $0x18] sm:$0xff]  ;;  %v211_v11 = vld [vmem:[%s651_s2 + $0x8] sm:$0xff] }
   0xf   : > { %228 = vperm.xlu1 %518, %v212_v3   ;;  %218 = vperm.xlu0 %517, %v210_v4   ;;  %v203_v5 = vld [vmem:[%s193_s27 + $0x8] sm:$0xff]  ;;  %v202_v6 = vld [vmem:[%s193_s27] sm:$0xff]  ;;  %s201_s24 = scalar_lea.vmem %s652_s3, %s491_s21 }
  0x10   : > { %474 = vmatprep.subr.mxu0 %v203_v5  ;;  %487 = vmatprep.subr.mxu1 %v203_v5  ;;  %v209_v12 = vld [vmem:[%s650_s1 + $0x28] sm:$0xff]  ;;  %v214_v14 = vld [vmem:[%s651_s2 + $0x20] sm:$0xff] }
  0x11   : > { %475 = vmatpush3.msra.mxu0 %v203_v5  ;;  %489 = vmatpush3.msra.mxu1 %v203_v5  ;;  %v215_v13 = vld [vmem:[%s651_s2 + $0x28] sm:$0xff] }
  0x12   : > { %476 = vmatprep.subr.mxu0 %v202_v6  ;;  %488 = vmatprep.subr.mxu1 %v202_v6 }
  0x13   : > { %477 = vmatpush3.msra.mxu0 %v202_v6  ;;  %490 = vmatpush3.msra.mxu1 %v202_v6 }
  0x14   : > { %479 = vmatmul.mubr.msk.f32.vlgmr.msra.gmra.mxu0 %vm246_vm0, %v205_v7  ;;  %482 = vmatmul.mubr.msk.f32.vlgmr.msra.gmra.mxu1 %vm246_vm0, %v207_v8 }
  0x15   : > { %484 = vmatprep.mubr.msk.f32.mxu1 %vm246_vm0, %v208_v9  ;;  %233 = vperm.xlu1 %518, %v213_v10  }
  0x16   : > { %223 = vperm.xlu0 %517, %v211_v11  }
  0x18   : > { %485 = vmatmul.mubr.msk.f32.gmra.mxu1 %vm246_vm0, %v209_v12 }
  0x19   : > { %243 = vperm.xlu1 %518, %v215_v13  }
  0x1a   : > { %238 = vperm.xlu0 %517, %v214_v14  }
  0x8a   : > { %v229_v15 = vpop.permute.xlu1 %228  ;;  %v219_v16 = vpop.permute.xlu0 %218 }
  0x90   : > { %v234_v17 = vpop.permute.xlu1 %233 }
  0x91   : > { %v224_v18 = vpop.permute.xlu0 %223 }
  0x94   : > { %v244_v27 = vpop.permute.xlu1 %243 }
  0x95   : > { %v239_v30 = vpop.permute.xlu0 %238 }
  0xd4   : > { %v480_v19 = vpop.f32.mrf.mxu0  ;;  %v483_v20 = vpop.f32.mrf.mxu1 }
  0xd5   : > { %v337_v21 = vadd.f32 %v480_v19, %v224_v18  ;;  %v347_v22 = vadd.f32 %v483_v20, %v234_v17 }
  0xd6   : > { %v331_v23 = vpop.f32.mrf.mxu0  ;;  %v341_v24 = vpop.f32.mrf.mxu1 }
  0xd7   : > { %361 = vst.msk [vmem:[%s201_s24 + $0x8] sm:$0xff] %vm246_vm0, %v337_v21  ;;  %363 = vst.msk [vmem:[%s201_s24 + $0x18] sm:$0xff] %vm246_vm0, %v347_v22  ;;  %v332_v25 = vadd.f32 %v331_v23, %v219_v16  ;;  %v342_v26 = vadd.f32 %v341_v24, %v229_v15 }
  0xd8   : > { %v486_v28 = vpop.f32.mrf.mxu1 }
  0xd9   : > { %360 = vst.msk [vmem:[%s201_s24] sm:$0xff] %vm246_vm0, %v332_v25  ;;  %362 = vst.msk [vmem:[%s201_s24 + $0x10] sm:$0xff] %vm246_vm0, %v342_v26  ;;  %v357_v29 = vadd.f32 %v486_v28, %v244_v27 }
  0xda   : > { %v351_v31 = vpop.f32.mrf.mxu1 }
  0xdb   : > { %365 = vst.msk [vmem:[%s201_s24 + $0x28] sm:$0xff] %vm246_vm0, %v357_v29  ;;  %v352_v32 = vadd.f32 %v351_v31, %v239_v30 }
  0xdd   : > { %364 = vst.msk [vmem:[%s201_s24 + $0x20] sm:$0xff] %vm246_vm0, %v352_v32 }
  0xde PF: > { %s13_s14 = sadd.s32 1, %s541_s14   ;;  %s653_s12 = smov %s537_s13 }
  0xdf   : > { %p10_p5 = scmp.ge.s32.totalorder %s13_s14, 4   ;;  %s654_s13 = smov %s656_s15 }
  0xe1   :  { %12 = sbr.rel (!%p10_p5) target bundleno = 2 (0x2), region = 62 }

</bundles_post_ra>
